<compile_context>
chip_gen: v7x
topology: tpu7x:2x2x1
jax: 0.10.0
libtpu: 0.0.40
codegen_flags: <defaults>
</compile_context>

<pallas_src>
import functools

import jax
import jax.numpy as jnp
import numpy as np
from jax.experimental import pallas as pl
from jax.experimental.pallas import tpu as pltpu


def _ru8(n: int) -> int:
    return ((n + 7) // 8) * 8


def _ru128(n: int) -> int:
    return ((n + 127) // 128) * 128


def _lstm_offsets(L: int, A: int, H: int):
    """Row offsets inside the stacked LSTM weight slab (lane width = 4H).

    Layout (all segments start on 8-row boundaries):
      [0       : L+A    ]  W_ih0^T   (xa rows, zero-padded to la_pad)
      [off_hh0 : +H     ]  W_hh0^T
      [off_b0           ]  b_ih0 + b_hh0
      [off_ih1 : +H     ]  W_ih1^T
      [off_hh1 : +H     ]  W_hh1^T
      [off_b1           ]  b_ih1 + b_hh1
    """
    la_pad = _ru8(L + A)
    off_hh0 = la_pad
    off_b0 = off_hh0 + _ru8(H)
    off_ih1 = _ru8(off_b0 + 1)
    off_hh1 = off_ih1 + _ru8(H)
    off_b1 = off_hh1 + _ru8(H)
    return dict(la_pad=la_pad, off_hh0=off_hh0, off_b0=off_b0,
                off_ih1=off_ih1, off_hh1=off_hh1, off_b1=off_b1,
                rows=off_b1 + 1)


def _mlp_offsets(H: int, HL: int, KL: int):
    """Row offsets inside the stacked fc+MDN-head slab (lane width padded to 128).

      [0        : H      ]  W_fc^T     (lanes 0:HL, rest 0)
      [off_fc_b          ]  b_fc
      [off_hd_w : +hl_pad]  [W_mu|W_var|W_pi]^T  (rows 0:HL, lanes 0:3KL, rest 0)
      [off_hd_b          ]  [b_mu|b_var|b_pi]
    """
    hl_pad = _ru128(HL)           # lane width of feat
    lanes = max(hl_pad, _ru128(3 * KL))
    off_fc_b = H
    off_hd_w = _ru8(H + 1)
    off_hd_b = off_hd_w + hl_pad
    return dict(hl_pad=hl_pad, lanes=lanes, off_fc_b=off_fc_b,
                off_hd_w=off_hd_w, off_hd_b=off_hd_b, rows=off_hd_b + 1)


# ----------------------------- Pallas kernel --------------------------------
def _rnn_mdn_kernel(xa_ref, s_in_ref, wl_ref, wm_ref, head_ref, sout_ref,
                    *, L, A, H, HL, K):
    KL = K * L
    lo = _lstm_offsets(L, A, H)
    mo = _mlp_offsets(H, HL, KL)
    t = pl.program_id(0)
    f32 = jnp.float32

    # at t==0 seed the resident state block from the packed input state
    @pl.when(t == 0)
    def _():
        sout_ref[...] = s_in_ref[...]

    s = sout_ref[...]                         # (B, 4H) = [h0 | h1 | c0 | c1]
    h0p = s[:, 0:H]
    h1p = s[:, H:2 * H]
    c0p = s[:, 2 * H:3 * H]
    c1p = s[:, 3 * H:4 * H]
    xa = xa_ref[...]                          # (B, la_pad), zero-padded past L+A

    def lstm(gates, c_prev):
        # one full-vreg sigmoid + one full-vreg tanh, then lane-slice i/f/g/o
        sg = jax.nn.sigmoid(gates)
        tg = jnp.tanh(gates)
        i = sg[:, 0:H]
        f = sg[:, H:2 * H]
        o = sg[:, 3 * H:4 * H]
        g = tg[:, 2 * H:3 * H]
        c_new = f * c_prev + i * g
        h_new = o * jnp.tanh(c_new)
        return h_new, c_new

    # ---- LSTM layer 0 (x and a folded into one dot via the xa slab) ----
    g0 = (jnp.dot(xa, wl_ref[0:lo["la_pad"], :], preferred_element_type=f32)
          + jnp.dot(h0p, wl_ref[lo["off_hh0"]:lo["off_hh0"] + H, :],
                    preferred_element_type=f32)
          + wl_ref[lo["off_b0"]:lo["off_b0"] + 1, :])
    h0n, c0n = lstm(g0, c0p)

    # ---- LSTM layer 1 ----
    g1 = (jnp.dot(h0n, wl_ref[lo["off_ih1"]:lo["off_ih1"] + H, :],
                  preferred_element_type=f32)
          + jnp.dot(h1p, wl_ref[lo["off_hh1"]:lo["off_hh1"] + H, :],
                    preferred_element_type=f32)
          + wl_ref[lo["off_b1"]:lo["off_b1"] + 1, :])
    h1n, c1n = lstm(g1, c1p)

    # single lane-dense state store; carried across grid steps, written back once
    sout_ref[...] = jnp.concatenate([h0n, h1n, c0n, c1n], axis=1)

    # ---- MDN head (fc + fused [mu|var|pi] matmul) ----
    z = (jnp.dot(h1n, wm_ref[0:H, :], preferred_element_type=f32)
         + wm_ref[mo["off_fc_b"]:mo["off_fc_b"] + 1, :])
    feat = jnp.maximum(z, 0.01 * z)           # LeakyReLU; pad lanes stay exactly 0
    hd = (jnp.dot(feat, wm_ref[mo["off_hd_w"]:mo["off_hd_w"] + mo["hl_pad"], :],
                  preferred_element_type=f32)
          + wm_ref[mo["off_hd_b"]:mo["off_hd_b"] + 1, :])
    # hd lanes: [0:KL)=mu  [KL:2KL)=var logits  [2KL:3KL)=pi logits  rest 0

    mu = hd[:, 0:KL]
    pil = hd[:, 2 * KL:3 * KL]

    # max over the K gaussians (K-major, L-minor lane blocks), tiled back over K
    m = pil[:, 0:L]
    for k in range(1, K):
        m = jnp.maximum(m, pil[:, k * L:(k + 1) * L])
    m_t = jnp.concatenate([m] * K, axis=1)

    # single EUP pass: exp of [var logits | pi logits - max]
    ev = jnp.exp(jnp.concatenate([hd[:, KL:2 * KL], pil - m_t], axis=1))
    var = ev[:, 0:KL]
    es = ev[:, KL:2 * KL]

    denom = es[:, 0:L]
    for k in range(1, K):
        denom = denom + es[:, k * L:(k + 1) * L]
    inv = 1.0 / denom                          # exact divide (1e-4 tolerance)
    pi = es * jnp.concatenate([inv] * K, axis=1)

    # assemble in registers; one full-width unmasked store
    pieces = [mu, var, pi]
    pad = mo["lanes"] - 3 * KL
    if pad > 0:
        pieces.append(jnp.zeros((mu.shape[0], pad), f32))
    head_ref[...] = jnp.concatenate(pieces, axis=1)


# ------------------------------- wrappers ------------------------------------
def rnn_mdn_rollout(params, x_seq, a_seq, h, c):
    """T steps with the time loop inside the kernel (weights stay VMEM-resident).

    x_seq: (T, B, L), a_seq: (T, B, A), h/c: (2, B, H).
    Returns heads (T, B, 3*K*L) ordered [mu | var | softmax(pi)] and (h_new, c_new).
    """
    L = params["input_size"]
    A = params["action_dim"]
    H = params["hidden_size"]
    HL = params["hidden_layer"]
    K = params["num_gaussians"]
    KL = K * L
    lo = _lstm_offsets(L, A, H)
    mo = _mlp_offsets(H, HL, KL)
    T, B = x_seq.shape[0], x_seq.shape[1]

    # pre-concatenated, zero-padded xa slab (folds the x and a dots into one)
    xa = jnp.zeros((T, B, lo["la_pad"]), jnp.float32)
    xa = xa.at[:, :, 0:L].set(x_seq).at[:, :, L:L + A].set(a_seq)
    # packed lane-dense state input [h0 | h1 | c0 | c1]
    s_in = jnp.concatenate([h[0], h[1], c[0], c[1]], axis=1)

    kernel = functools.partial(_rnn_mdn_kernel, L=L, A=A, H=H, HL=HL, K=K)
    heads, s_out = pl.pallas_call(
        kernel,
        grid=(T,),
        in_specs=[
            pl.BlockSpec((None, B, lo["la_pad"]), lambda t: (t, 0, 0)),   # xa (streamed)
            pl.BlockSpec((B, 4 * H), lambda t: (0, 0)),                   # state in
            pl.BlockSpec((lo["rows"], 4 * H), lambda t: (0, 0)),          # LSTM slab
            pl.BlockSpec((mo["rows"], mo["lanes"]), lambda t: (0, 0)),    # fc+head slab
        ],
        out_specs=(
            pl.BlockSpec((None, B, mo["lanes"]), lambda t: (t, 0, 0)),    # per-step head
            pl.BlockSpec((B, 4 * H), lambda t: (0, 0)),                   # final state
        ),
        out_shape=(
            jax.ShapeDtypeStruct((T, B, mo["lanes"]), jnp.float32),
            jax.ShapeDtypeStruct((B, 4 * H), jnp.float32),
        ),
        compiler_params=pltpu.CompilerParams(dimension_semantics=("arbitrary",)),
    )(xa, s_in, params["w_lstm"], params["w_mlp"])

    h_new = jnp.stack([s_out[:, 0:H], s_out[:, H:2 * H]], axis=0)
    c_new = jnp.stack([s_out[:, 2 * H:3 * H], s_out[:, 3 * H:4 * H]], axis=0)
    return heads[:, :, 0:3 * KL], (h_new, c_new)


def rnn_mdn_forward(params, x, a, h, c):
    """Mirrors RNN_MDN.forward (single step): ((mu, var), (h_new, c_new)), plus pi."""
    B = x.shape[0]
    L = params["input_size"]
    K = params["num_gaussians"]
    KL = K * L
    heads, (h_new, c_new) = rnn_mdn_rollout(params, x[None], a[None], h, c)
    head = heads[0]
    mu = head[:, 0:KL].reshape(B, 1, K, L)
    var = head[:, KL:2 * KL].reshape(B, 1, K, L)
    pi = head[:, 2 * KL:3 * KL].reshape(B, 1, K, L)
    return (mu, var), (h_new, c_new), pi


# ------------------------- deterministic parameters --------------------------
def init_params(key, input_size, action_dim, hidden_size, hidden_layer, num_gaussians):
    L, A, H, HL, K = input_size, action_dim, hidden_size, hidden_layer, num_gaussians
    Din = L + A
    KL = K * L

    def uni(k, shape, fan_in):
        bound = 1.0 / np.sqrt(fan_in)
        return jax.random.uniform(k, shape, jnp.float32, -bound, bound)

    ks = jax.random.split(key, 16)
    raw = {
        # PyTorch-layout LSTM weights (gate order i, f, g, o)
        "W_ih0": uni(ks[0], (4 * H, Din), H), "W_hh0": uni(ks[1], (4 * H, H), H),
        "b_ih0": uni(ks[2], (4 * H,), H),     "b_hh0": uni(ks[3], (4 * H,), H),
        "W_ih1": uni(ks[4], (4 * H, H), H),   "W_hh1": uni(ks[5], (4 * H, H), H),
        "b_ih1": uni(ks[6], (4 * H,), H),     "b_hh1": uni(ks[7], (4 * H,), H),
        # Linear layers (out, in) like nn.Linear
        "W_fc": uni(ks[8], (HL, H), H),       "b_fc": uni(ks[9], (HL,), H),
        "W_mu": uni(ks[10], (KL, HL), HL),    "b_mu": uni(ks[11], (KL,), HL),
        "W_var": uni(ks[12], (KL, HL), HL),   "b_var": uni(ks[13], (KL,), HL),
        "W_pi": uni(ks[14], (KL, HL), HL),    "b_pi": uni(ks[15], (KL,), HL),
    }

    # --- stacked LSTM slab (both layers), lane width 4H ---
    lo = _lstm_offsets(L, A, H)
    w_lstm = jnp.zeros((lo["rows"], 4 * H), jnp.float32)
    w_lstm = w_lstm.at[0:Din].set(raw["W_ih0"].T)
    w_lstm = w_lstm.at[lo["off_hh0"]:lo["off_hh0"] + H].set(raw["W_hh0"].T)
    w_lstm = w_lstm.at[lo["off_b0"]].set(raw["b_ih0"] + raw["b_hh0"])
    w_lstm = w_lstm.at[lo["off_ih1"]:lo["off_ih1"] + H].set(raw["W_ih1"].T)
    w_lstm = w_lstm.at[lo["off_hh1"]:lo["off_hh1"] + H].set(raw["W_hh1"].T)
    w_lstm = w_lstm.at[lo["off_b1"]].set(raw["b_ih1"] + raw["b_hh1"])

    # --- stacked fc + MDN head slab, lanes padded to 128 ---
    mo = _mlp_offsets(H, HL, KL)
    w_mlp = jnp.zeros((mo["rows"], mo["lanes"]), jnp.float32)
    w_mlp = w_mlp.at[0:H, 0:HL].set(raw["W_fc"].T)
    w_mlp = w_mlp.at[mo["off_fc_b"], 0:HL].set(raw["b_fc"])
    w_head = jnp.concatenate([raw["W_mu"].T, raw["W_var"].T, raw["W_pi"].T], axis=1)
    b_head = jnp.concatenate([raw["b_mu"], raw["b_var"], raw["b_pi"]])
    w_mlp = w_mlp.at[mo["off_hd_w"]:mo["off_hd_w"] + HL, 0:3 * KL].set(w_head)
    w_mlp = w_mlp.at[mo["off_hd_b"], 0:3 * KL].set(b_head)

    params = dict(input_size=L, action_dim=A, hidden_size=H, hidden_layer=HL,
                  num_gaussians=K, w_lstm=w_lstm, w_mlp=w_mlp)
    return params, raw


# ------------------------ pure-JAX reference (oracle) ------------------------
def forward_ref(raw, x, a, h, c, input_size, hidden_size, num_gaussians):
    H, K, L = hidden_size, num_gaussians, input_size
    inp = jnp.concatenate([x, a], axis=1)

    def cell(x_t, hp, cp, Wih, Whh, bih, bhh):
        gates = x_t @ Wih.T + bih + hp @ Whh.T + bhh
        i, f, g, o = jnp.split(gates, 4, axis=1)
        cn = jax.nn.sigmoid(f) * cp + jax.nn.sigmoid(i) * jnp.tanh(g)
        hn = jax.nn.sigmoid(o) * jnp.tanh(cn)
        return hn, cn

    h0n, c0n = cell(inp, h[0], c[0], raw["W_ih0"], raw["W_hh0"], raw["b_ih0"], raw["b_hh0"])
    h1n, c1n = cell(h0n, h[1], c[1], raw["W_ih1"], raw["W_hh1"], raw["b_ih1"], raw["b_hh1"])

    B = x.shape[0]
    feat = h1n @ raw["W_fc"].T + raw["b_fc"]
    feat = jnp.where(feat > 0, feat, 0.01 * feat)
    mu = (feat @ raw["W_mu"].T + raw["b_mu"]).reshape(B, 1, K, L)
    var = jnp.exp(feat @ raw["W_var"].T + raw["b_var"]).reshape(B, 1, K, L)
    pi = jax.nn.softmax((feat @ raw["W_pi"].T + raw["b_pi"]).reshape(B, 1, K, L), axis=2)
    h_new = jnp.stack([h0n, h1n], axis=0)
    c_new = jnp.stack([c0n, c1n], axis=0)
    return (mu, var), (h_new, c_new), pi


# ---------------------------------- main -------------------------------------
if __name__ == "__main__":
    B = 2
    input_size = 8      # L
    action_dim = 4
    hidden_size = 32    # H  (4H = 128 -> one vreg of lanes per LSTM layer)
    hidden_layer = 40   # HL
    num_gaussians = 4   # K
    num_layers = 2
    KL = num_gaussians * input_size

    key = jax.random.PRNGKey(0)
    kp, kx, ka, kh, kc, ks = jax.random.split(key, 6)
    params, raw = init_params(kp, input_size, action_dim, hidden_size,
                              hidden_layer, num_gaussians)

    x = jax.random.normal(kx, (B, input_size), jnp.float32)
    a = jax.random.normal(ka, (B, action_dim), jnp.float32)
    h0 = jax.random.normal(kh, (num_layers, B, hidden_size), jnp.float32)
    c0 = jax.random.normal(kc, (num_layers, B, hidden_size), jnp.float32)

    # --- single-step forward (mirrors RNN_MDN.forward) ---
    (mu, var), (h_new, c_new), pi = jax.block_until_ready(
        rnn_mdn_forward(params, x, a, h0, c0))
    (mu_r, var_r), (h_r, c_r), pi_r = forward_ref(
        raw, x, a, h0, c0, input_size, hidden_size, num_gaussians)
    for got, want in [(mu, mu_r), (var, var_r), (pi, pi_r), (h_new, h_r), (c_new, c_r)]:
        np.testing.assert_allclose(np.asarray(got), np.asarray(want), rtol=1e-4, atol=1e-4)

    # --- multi-step rollout: same kernel, time loop on-chip ---
    T = 4
    kxs, kas = jax.random.split(ks)
    xs = jax.random.normal(kxs, (T, B, input_size), jnp.float32)
    as_ = jax.random.normal(kas, (T, B, action_dim), jnp.float32)
    heads, (hT, cT) = jax.block_until_ready(rnn_mdn_rollout(params, xs, as_, h0, c0))

    hh, cc = h0, c0
    for t in range(T):
        (mu_r, var_r), (hh, cc), pi_r = forward_ref(
            raw, xs[t], as_[t], hh, cc, input_size, hidden_size, num_gaussians)
        step = np.asarray(heads[t])
        np.testing.assert_allclose(step[:, 0:KL], np.asarray(mu_r).reshape(B, KL),
                                   rtol=1e-4, atol=1e-4)
        np.testing.assert_allclose(step[:, KL:2 * KL], np.asarray(var_r).reshape(B, KL),
                                   rtol=1e-4, atol=1e-4)
        np.testing.assert_allclose(step[:, 2 * KL:3 * KL], np.asarray(pi_r).reshape(B, KL),
                                   rtol=1e-4, atol=1e-4)
    np.testing.assert_allclose(np.asarray(hT), np.asarray(hh), rtol=1e-4, atol=1e-4)
    np.testing.assert_allclose(np.asarray(cT), np.asarray(cc), rtol=1e-4, atol=1e-4)

    print("KERNEL_OK")
</pallas_src>

<mosaic_0001>
module attributes {stable_mosaic.version = 11 : i64} {
  func.func @_rnn_mdn_kernel(%arg0: i32, %arg1: memref<1x2x16xf32, #tpu.memory_space<vmem>>, %arg2: memref<2x128xf32, #tpu.memory_space<vmem>>, %arg3: memref<121x128xf32, #tpu.memory_space<vmem>>, %arg4: memref<169x128xf32, #tpu.memory_space<vmem>>, %arg5: memref<1x2x128xf32, #tpu.memory_space<vmem>>, %arg6: memref<2x128xf32, #tpu.memory_space<vmem>>) attributes {dimension_semantics = [#tpu.dimension_semantics<arbitrary>], iteration_bounds = array<i64: 1>, scalar_prefetch = 0 : i64, scratch_operands = 0 : i64, tpu.core_type = #tpu.core_type<tc>, window_params = [{transform_indices = @transform_0, window_bounds = array<i64: 1, 2, 16>}, {pipeline_mode = #tpu.pipeline_mode<synchronous>, transform_indices = @transform_1, window_bounds = array<i64: 2, 128>}, {pipeline_mode = #tpu.pipeline_mode<synchronous>, transform_indices = @transform_2, window_bounds = array<i64: 121, 128>}, {pipeline_mode = #tpu.pipeline_mode<synchronous>, transform_indices = @transform_3, window_bounds = array<i64: 169, 128>}, {transform_indices = @transform_4, window_bounds = array<i64: 1, 2, 128>}, {pipeline_mode = #tpu.pipeline_mode<synchronous>, transform_indices = @transform_5, window_bounds = array<i64: 2, 128>}]} {
    %c0_i32 = arith.constant 0 : i32
    %0 = arith.cmpi eq, %arg0, %c0_i32 : i32
    %1 = arith.extui %0 : i1 to i32
    %c0_i32_0 = arith.constant 0 : i32
    %2 = arith.cmpi ne, %1, %c0_i32_0 : i32
    scf.if %2 {
      %c0_32 = arith.constant 0 : index
      %c0_33 = arith.constant 0 : index
      %103 = vector.load %arg2[%c0_32, %c0_33] : memref<2x128xf32, #tpu.memory_space<vmem>>, vector<2x128xf32>
      %c0_34 = arith.constant 0 : index
      %c0_35 = arith.constant 0 : index
      %104 = vector.load %arg6[%c0_34, %c0_35] : memref<2x128xf32, #tpu.memory_space<vmem>>, vector<2x128xf32>
      tpu.vector_store %arg6[%c0_34, %c0_35], %103 {strides = array<i32>} : memref<2x128xf32, #tpu.memory_space<vmem>>, vector<2x128xf32>,
    } else {
    }
    %c0 = arith.constant 0 : index
    %c0_1 = arith.constant 0 : index
    %3 = vector.load %arg6[%c0, %c0_1] : memref<2x128xf32, #tpu.memory_space<vmem>>, vector<2x128xf32>
    %4 = vector.extract_strided_slice %3 {offsets = [0, 0], sizes = [2, 32], strides = [1, 1]} : vector<2x128xf32> to vector<2x32xf32>
    %5 = vector.extract_strided_slice %3 {offsets = [0, 32], sizes = [2, 32], strides = [1, 1]} : vector<2x128xf32> to vector<2x32xf32>
    %6 = vector.extract_strided_slice %3 {offsets = [0, 64], sizes = [2, 32], strides = [1, 1]} : vector<2x128xf32> to vector<2x32xf32>
    %7 = vector.extract_strided_slice %3 {offsets = [0, 96], sizes = [2, 32], strides = [1, 1]} : vector<2x128xf32> to vector<2x32xf32>
    %c0_2 = arith.constant 0 : index
    %c0_3 = arith.constant 0 : index
    %c0_4 = arith.constant 0 : index
    %8 = vector.load %arg1[%c0_2, %c0_3, %c0_4] : memref<1x2x16xf32, #tpu.memory_space<vmem>>, vector<1x2x16xf32>
    %9 = vector.shape_cast %8 : vector<1x2x16xf32> to vector<2x16xf32>
    %c0_5 = arith.constant 0 : index
    %c0_6 = arith.constant 0 : index
    %10 = vector.load %arg3[%c0_5, %c0_6] : memref<121x128xf32, #tpu.memory_space<vmem>>, vector<16x128xf32>
    %cst = arith.constant dense<0.000000e+00> : vector<2x128xf32>
    %11 = tpu.matmul %9, %10, %cst {dimension_numbers = #tpu.dot_dimension_numbers<[1], [0], [0], [1], [0, 0, 1, 1], [], []>} : vector<2x16xf32>, vector<16x128xf32>, vector<2x128xf32> -> vector<2x128xf32>
    %c16 = arith.constant 16 : index
    %c0_7 = arith.constant 0 : index
    %12 = vector.load %arg3[%c16, %c0_7] : memref<121x128xf32, #tpu.memory_space<vmem>>, vector<32x128xf32>
    %cst_8 = arith.constant dense<0.000000e+00> : vector<2x128xf32>
    %13 = tpu.matmul %4, %12, %cst_8 {dimension_numbers = #tpu.dot_dimension_numbers<[1], [0], [0], [1], [0, 0, 1, 1], [], []>} : vector<2x32xf32>, vector<32x128xf32>, vector<2x128xf32> -> vector<2x128xf32>
    %14 = arith.addf %11, %13 : vector<2x128xf32>
    %c48 = arith.constant 48 : index
    %c0_9 = arith.constant 0 : index
    %15 = vector.load %arg3[%c48, %c0_9] : memref<121x128xf32, #tpu.memory_space<vmem>>, vector<1x128xf32>
    %16 = vector.broadcast %15 : vector<1x128xf32> to vector<2x128xf32>
    %17 = arith.addf %14, %16 : vector<2x128xf32>
    %18 = arith.negf %17 : vector<2x128xf32>
    %19 = math.exp %18 : vector<2x128xf32>
    %cst_10 = arith.constant 1.000000e+00 : f32
    %20 = vector.broadcast %cst_10 : f32 to vector<2x128xf32>
    %21 = arith.addf %20, %19 : vector<2x128xf32>
    %22 = arith.divf %20, %21 : vector<2x128xf32>
    %23 = math.tanh %17 : vector<2x128xf32>
    %24 = vector.extract_strided_slice %22 {offsets = [0, 0], sizes = [2, 32], strides = [1, 1]} : vector<2x128xf32> to vector<2x32xf32>
    %25 = vector.extract_strided_slice %22 {offsets = [0, 32], sizes = [2, 32], strides = [1, 1]} : vector<2x128xf32> to vector<2x32xf32>
    %26 = vector.extract_strided_slice %22 {offsets = [0, 96], sizes = [2, 32], strides = [1, 1]} : vector<2x128xf32> to vector<2x32xf32>
    %27 = vector.extract_strided_slice %23 {offsets = [0, 64], sizes = [2, 32], strides = [1, 1]} : vector<2x128xf32> to vector<2x32xf32>
    %28 = arith.mulf %25, %6 : vector<2x32xf32>
    %29 = arith.mulf %24, %27 : vector<2x32xf32>
    %30 = arith.addf %28, %29 : vector<2x32xf32>
    %31 = math.tanh %30 : vector<2x32xf32>
    %32 = arith.mulf %26, %31 : vector<2x32xf32>
    %c56 = arith.constant 56 : index
    %c0_11 = arith.constant 0 : index
    %33 = vector.load %arg3[%c56, %c0_11] : memref<121x128xf32, #tpu.memory_space<vmem>>, vector<32x128xf32>
    %cst_12 = arith.constant dense<0.000000e+00> : vector<2x128xf32>
    %34 = tpu.matmul %32, %33, %cst_12 {dimension_numbers = #tpu.dot_dimension_numbers<[1], [0], [0], [1], [0, 0, 1, 1], [], []>} : vector<2x32xf32>, vector<32x128xf32>, vector<2x128xf32> -> vector<2x128xf32>
    %c88 = arith.constant 88 : index
    %c0_13 = arith.constant 0 : index
    %35 = vector.load %arg3[%c88, %c0_13] : memref<121x128xf32, #tpu.memory_space<vmem>>, vector<32x128xf32>
    %cst_14 = arith.constant dense<0.000000e+00> : vector<2x128xf32>
    %36 = tpu.matmul %5, %35, %cst_14 {dimension_numbers = #tpu.dot_dimension_numbers<[1], [0], [0], [1], [0, 0, 1, 1], [], []>} : vector<2x32xf32>, vector<32x128xf32>, vector<2x128xf32> -> vector<2x128xf32>
    %37 = arith.addf %34, %36 : vector<2x128xf32>
    %c120 = arith.constant 120 : index
    %c0_15 = arith.constant 0 : index
    %38 = vector.load %arg3[%c120, %c0_15] : memref<121x128xf32, #tpu.memory_space<vmem>>, vector<1x128xf32>
    %39 = vector.broadcast %38 : vector<1x128xf32> to vector<2x128xf32>
    %40 = arith.addf %37, %39 : vector<2x128xf32>
    %41 = arith.negf %40 : vector<2x128xf32>
    %42 = math.exp %41 : vector<2x128xf32>
    %cst_16 = arith.constant 1.000000e+00 : f32
    %43 = vector.broadcast %cst_16 : f32 to vector<2x128xf32>
    %44 = arith.addf %43, %42 : vector<2x128xf32>
    %45 = arith.divf %43, %44 : vector<2x128xf32>
    %46 = math.tanh %40 : vector<2x128xf32>
    %47 = vector.extract_strided_slice %45 {offsets = [0, 0], sizes = [2, 32], strides = [1, 1]} : vector<2x128xf32> to vector<2x32xf32>
    %48 = vector.extract_strided_slice %45 {offsets = [0, 32], sizes = [2, 32], strides = [1, 1]} : vector<2x128xf32> to vector<2x32xf32>
    %49 = vector.extract_strided_slice %45 {offsets = [0, 96], sizes = [2, 32], strides = [1, 1]} : vector<2x128xf32> to vector<2x32xf32>
    %50 = vector.extract_strided_slice %46 {offsets = [0, 64], sizes = [2, 32], strides = [1, 1]} : vector<2x128xf32> to vector<2x32xf32>
    %51 = arith.mulf %48, %7 : vector<2x32xf32>
    %52 = arith.mulf %47, %50 : vector<2x32xf32>
    %53 = arith.addf %51, %52 : vector<2x32xf32>
    %54 = math.tanh %53 : vector<2x32xf32>
    %55 = arith.mulf %49, %54 : vector<2x32xf32>
    %56 = tpu.concatenate %32, %55, %30, %53 in 1 : vector<2x32xf32>, vector<2x32xf32>, vector<2x32xf32>, vector<2x32xf32> -> vector<2x128xf32>
    %c0_17 = arith.constant 0 : index
    %c0_18 = arith.constant 0 : index
    %57 = vector.load %arg6[%c0_17, %c0_18] : memref<2x128xf32, #tpu.memory_space<vmem>>, vector<2x128xf32>
    tpu.vector_store %arg6[%c0_17, %c0_18], %56 {strides = array<i32>} : memref<2x128xf32, #tpu.memory_space<vmem>>, vector<2x128xf32>,
    %c0_19 = arith.constant 0 : index
    %c0_20 = arith.constant 0 : index
    %58 = vector.load %arg4[%c0_19, %c0_20] : memref<169x128xf32, #tpu.memory_space<vmem>>, vector<32x128xf32>
    %cst_21 = arith.constant dense<0.000000e+00> : vector<2x128xf32>
    %59 = tpu.matmul %55, %58, %cst_21 {dimension_numbers = #tpu.dot_dimension_numbers<[1], [0], [0], [1], [0, 0, 1, 1], [], []>} : vector<2x32xf32>, vector<32x128xf32>, vector<2x128xf32> -> vector<2x128xf32>
    %c32 = arith.constant 32 : index
    %c0_22 = arith.constant 0 : index
    %60 = vector.load %arg4[%c32, %c0_22] : memref<169x128xf32, #tpu.memory_space<vmem>>, vector<1x128xf32>
    %61 = vector.broadcast %60 : vector<1x128xf32> to vector<2x128xf32>
    %62 = arith.addf %59, %61 : vector<2x128xf32>
    %cst_23 = arith.constant 0.00999999977 : f32
    %63 = vector.broadcast %cst_23 : f32 to vector<2x128xf32>
    %64 = arith.mulf %63, %62 : vector<2x128xf32>
    %65 = arith.maximumf %62, %64 : vector<2x128xf32>
    %c40 = arith.constant 40 : index
    %c0_24 = arith.constant 0 : index
    %66 = vector.load %arg4[%c40, %c0_24] : memref<169x128xf32, #tpu.memory_space<vmem>>, vector<128x128xf32>
    %cst_25 = arith.constant dense<0.000000e+00> : vector<2x128xf32>
    %67 = tpu.matmul %65, %66, %cst_25 {dimension_numbers = #tpu.dot_dimension_numbers<[1], [0], [0], [1], [0, 0, 1, 1], [], []>} : vector<2x128xf32>, vector<128x128xf32>, vector<2x128xf32> -> vector<2x128xf32>
    %c168 = arith.constant 168 : index
    %c0_26 = arith.constant 0 : index
    %68 = vector.load %arg4[%c168, %c0_26] : memref<169x128xf32, #tpu.memory_space<vmem>>, vector<1x128xf32>
    %69 = vector.broadcast %68 : vector<1x128xf32> to vector<2x128xf32>
    %70 = arith.addf %67, %69 : vector<2x128xf32>
    %71 = vector.extract_strided_slice %70 {offsets = [0, 0], sizes = [2, 32], strides = [1, 1]} : vector<2x128xf32> to vector<2x32xf32>
    %72 = vector.extract_strided_slice %70 {offsets = [0, 64], sizes = [2, 32], strides = [1, 1]} : vector<2x128xf32> to vector<2x32xf32>
    %73 = vector.extract_strided_slice %72 {offsets = [0, 0], sizes = [2, 8], strides = [1, 1]} : vector<2x32xf32> to vector<2x8xf32>
    %74 = vector.extract_strided_slice %72 {offsets = [0, 8], sizes = [2, 8], strides = [1, 1]} : vector<2x32xf32> to vector<2x8xf32>
    %75 = arith.maximumf %73, %74 : vector<2x8xf32>
    %76 = vector.extract_strided_slice %72 {offsets = [0, 16], sizes = [2, 8], strides = [1, 1]} : vector<2x32xf32> to vector<2x8xf32>
    %77 = arith.maximumf %75, %76 : vector<2x8xf32>
    %78 = vector.extract_strided_slice %72 {offsets = [0, 24], sizes = [2, 8], strides = [1, 1]} : vector<2x32xf32> to vector<2x8xf32>
    %79 = arith.maximumf %77, %78 : vector<2x8xf32>
    %80 = tpu.concatenate %79, %79, %79, %79 in 1 : vector<2x8xf32>, vector<2x8xf32>, vector<2x8xf32>, vector<2x8xf32> -> vector<2x32xf32>
    %81 = vector.extract_strided_slice %70 {offsets = [0, 32], sizes = [2, 32], strides = [1, 1]} : vector<2x128xf32> to vector<2x32xf32>
    %82 = arith.subf %72, %80 : vector<2x32xf32>
    %83 = tpu.concatenate %81, %82 in 1 : vector<2x32xf32>, vector<2x32xf32> -> vector<2x64xf32>
    %84 = math.exp %83 : vector<2x64xf32>
    %85 = vector.extract_strided_slice %84 {offsets = [0, 0], sizes = [2, 32], strides = [1, 1]} : vector<2x64xf32> to vector<2x32xf32>
    %86 = vector.extract_strided_slice %84 {offsets = [0, 32], sizes = [2, 32], strides = [1, 1]} : vector<2x64xf32> to vector<2x32xf32>
    %87 = vector.extract_strided_slice %86 {offsets = [0, 0], sizes = [2, 8], strides = [1, 1]} : vector<2x32xf32> to vector<2x8xf32>
    %88 = vector.extract_strided_slice %86 {offsets = [0, 8], sizes = [2, 8], strides = [1, 1]} : vector<2x32xf32> to vector<2x8xf32>
    %89 = arith.addf %87, %88 : vector<2x8xf32>
    %90 = vector.extract_strided_slice %86 {offsets = [0, 16], sizes = [2, 8], strides = [1, 1]} : vector<2x32xf32> to vector<2x8xf32>
    %91 = arith.addf %89, %90 : vector<2x8xf32>
    %92 = vector.extract_strided_slice %86 {offsets = [0, 24], sizes = [2, 8], strides = [1, 1]} : vector<2x32xf32> to vector<2x8xf32>
    %93 = arith.addf %91, %92 : vector<2x8xf32>
    %cst_27 = arith.constant 1.000000e+00 : f32
    %94 = vector.broadcast %cst_27 : f32 to vector<2x8xf32>
    %95 = arith.divf %94, %93 : vector<2x8xf32>
    %96 = tpu.concatenate %95, %95, %95, %95 in 1 : vector<2x8xf32>, vector<2x8xf32>, vector<2x8xf32>, vector<2x8xf32> -> vector<2x32xf32>
    %97 = arith.mulf %86, %96 : vector<2x32xf32>
    %cst_28 = arith.constant 0.000000e+00 : f32
    %98 = vector.broadcast %cst_28 : f32 to vector<2x32xf32>
    %99 = tpu.concatenate %71, %85, %97, %98 in 1 : vector<2x32xf32>, vector<2x32xf32>, vector<2x32xf32>, vector<2x32xf32> -> vector<2x128xf32>
    %c0_29 = arith.constant 0 : index
    %c0_30 = arith.constant 0 : index
    %c0_31 = arith.constant 0 : index
    %100 = vector.load %arg5[%c0_29, %c0_30, %c0_31] : memref<1x2x128xf32, #tpu.memory_space<vmem>>, vector<1x2x128xf32>
    %101 = vector.shape_cast %100 : vector<1x2x128xf32> to vector<2x128xf32>
    %102 = vector.shape_cast %99 : vector<2x128xf32> to vector<1x2x128xf32>
    tpu.vector_store %arg5[%c0_29, %c0_30, %c0_31], %102 {strides = array<i32>} : memref<1x2x128xf32, #tpu.memory_space<vmem>>, vector<1x2x128xf32>,
    return
  }
  func.func @transform_0(%arg0: i32) -> (i32, i32, i32) {
    %c0_i32 = arith.constant 0 : i32
    %c0_i32_0 = arith.constant 0 : i32
    %c0_i32_1 = arith.constant 0 : i32
    return %arg0, %c0_i32, %c0_i32_0 : i32, i32, i32
  }
  func.func @transform_1(%arg0: i32) -> (i32, i32) {
    %c0_i32 = arith.constant 0 : i32
    %c0_i32_0 = arith.constant 0 : i32
    %c0_i32_1 = arith.constant 0 : i32
    return %c0_i32, %c0_i32_0 : i32, i32
  }
  func.func @transform_2(%arg0: i32) -> (i32, i32) {
    %c0_i32 = arith.constant 0 : i32
    %c0_i32_0 = arith.constant 0 : i32
    %c0_i32_1 = arith.constant 0 : i32
    return %c0_i32, %c0_i32_0 : i32, i32
  }
  func.func @transform_3(%arg0: i32) -> (i32, i32) {
    %c0_i32 = arith.constant 0 : i32
    %c0_i32_0 = arith.constant 0 : i32
    %c0_i32_1 = arith.constant 0 : i32
    return %c0_i32, %c0_i32_0 : i32, i32
  }
  func.func @transform_4(%arg0: i32) -> (i32, i32, i32) {
    %c0_i32 = arith.constant 0 : i32
    %c0_i32_0 = arith.constant 0 : i32
    %c0_i32_1 = arith.constant 0 : i32
    return %arg0, %c0_i32, %c0_i32_0 : i32, i32, i32
  }
  func.func @transform_5(%arg0: i32) -> (i32, i32) {
    %c0_i32 = arith.constant 0 : i32
    %c0_i32_0 = arith.constant 0 : i32
    %c0_i32_1 = arith.constant 0 : i32
    return %c0_i32, %c0_i32_0 : i32, i32
  }
}

</mosaic_0001>

<bundles_post_ra>
// kernel: tpu_custom_call.1
= control target key start
LH: loop header
LB: loop body
LE: loop exit
PB: predicated region body
PF: predicated region fallthrough
CT: control target
= control target key end

     0   :  { %11 = vsyncpa [#allocation3], 0  ;;  %s1331_s0 = inlined_call_operand.hbm [shape: f32[1,2,16], index: 0, kind: input, shape index: {}]   ;;  %s1332_s1 = inlined_call_operand.vmem [shape: f32[2,128], index: 1, kind: input, shape index: {}]   ;;  %s1333_s2 = inlined_call_operand.hbm [shape: f32[121,128], index: 2, kind: input, shape index: {}]   ;;  %s1334_s3 = inlined_call_operand.hbm [shape: f32[169,128], index: 3, kind: input, shape index: {}]   ;;  %s1335_s4 = inlined_call_operand.hbm [shape: f32[1,2,128], index: 4, kind: output, shape index: {0}]   ;;  %s1336_s5 = inlined_call_operand.hbm [shape: f32[2,128], index: 5, kind: output, shape index: {1}]  }
   0x1   :  { %12 = vsyncpa [#allocation6], 0 }
   0x2   :  { %13 = vsyncpa [#allocation4], 0 }
   0x3   :  { %14 = vsyncpa [#allocation10], 0  ;;  %s1106_s18 = smov [#allocation5]   ;;  %s988_s22 = scalar_lea.hbm %s1333_s2, 2048 }
   0x4   :  { %s32_s19 = sshll.u32 %s1106_s18, 4  ;;  %p989_p0 = scmp.ne.s32.totalorder %s1333_s2, %s988_s22  ;;  %s33_s19 = int_to_ptr.vmem [resolvable:$true] %s32_s19 }
   0x5   :  { %p992_p1 = scmp.lt.u32.totalorder %s988_s22, %s1333_s2 }
   0x7   :  { %p994_p2 = pnand %p992_p1, %p989_p0 }
   0x9   :  { %997 = shalt.err (!%p994_p2)
}
   0xa   :  { %s998_s27 = scalar_lea.vmem %s33_s19, 2048  ;;  %p1003_p4 = scmp.lt.s32.totalorder %s33_s19, %s33_s19 }
   0xb   :  { %p999_p3 = scmp.ne.s32.totalorder %s33_s19, %s998_s27  ;;  %p1004_p5 = scmp.lt.s32.totalorder %s998_s27, %s998_s27 }
   0xd   :  { %p1005_p6 = por %p1004_p5, %p1003_p4 }
   0xf   :  { %p1006_p7 = pnand %p1005_p6, %p999_p3 }
  0x11   :  { %1009 = shalt.err (!%p1006_p7)
}
  0x12   :  { %s1107_s28 = smov 128   ;;  %s1108_s29 = smov 8  }
  0x13   :  { %38 = dma.hbm_to_vmem [thread:$0]  %s1333_s2, 2048, %s33_s19, [#allocation6], %s1107_s28, %s1107_s28, %s1108_s29  }
  0x14   :  { %s1109_s7 = smov [#allocation2]   ;;  %s1110_s9 = smov [#allocation7]  }
  0x15   :  { %s21_s8 = sshll.u32 %s1109_s7, 4  ;;  %s44_s10 = sshll.u32 %s1110_s9, 4  ;;  %s22_s8 = int_to_ptr.vmem [resolvable:$true] %s21_s8  ;;  %s45_s10 = int_to_ptr.vmem [resolvable:$true] %s44_s10 }
  0x16   :  { %s1010_s13 = scalar_lea.hbm %s1331_s0, 32 }
  0x17   :  { %p1011_p8 = scmp.ne.s32.totalorder %s1331_s0, %s1010_s13  ;;  %p1014_p9 = scmp.lt.u32.totalorder %s1010_s13, %s1331_s0 }
  0x19   :  { %p1016_p10 = pnand %p1014_p9, %p1011_p8 }
  0x1b   :  { %1019 = shalt.err (!%p1016_p10)
}
  0x1c   :  { %s1020_s2 = scalar_lea.vmem %s22_s8, 32  ;;  %p1025_p12 = scmp.lt.s32.totalorder %s22_s8, %s22_s8 }
  0x1d   :  { %p1021_p11 = scmp.ne.s32.totalorder %s22_s8, %s1020_s2  ;;  %p1026_p13 = scmp.lt.s32.totalorder %s1020_s2, %s1020_s2 }
  0x1f   :  { %p1027_p0 = por %p1026_p13, %p1025_p12 }
  0x21   :  { %p1028_p1 = pnand %p1027_p0, %p1021_p11 }
  0x23   :  { %1031 = shalt.err (!%p1028_p1)
}
  0x24   :  { %24 = dma.hbm_to_vmem [thread:$0]  %s1331_s0, 32, %s22_s8, [#allocation3]  }
  0x25   :  { %s1032_s22 = scalar_lea.hbm %s1334_s3, 2816 }
  0x26   :  { %p1033_p2 = scmp.ne.s32.totalorder %s1334_s3, %s1032_s22  ;;  %p1036_p3 = scmp.lt.u32.totalorder %s1032_s22, %s1334_s3 }
  0x28   :  { %p1038_p4 = pnand %p1036_p3, %p1033_p2 }
  0x2a   :  { %1041 = shalt.err (!%p1038_p4)
}
  0x2b   :  { %s1042_s27 = scalar_lea.vmem %s45_s10, 2816  ;;  %p1047_p6 = scmp.lt.s32.totalorder %s45_s10, %s45_s10 }
  0x2c   :  { %p1043_p5 = scmp.ne.s32.totalorder %s45_s10, %s1042_s27  ;;  %p1048_p7 = scmp.lt.s32.totalorder %s1042_s27, %s1042_s27 }
  0x2e   :  { %p1049_p8 = por %p1048_p7, %p1047_p6 }
  0x30   :  { %p1050_p9 = pnand %p1049_p8, %p1043_p5 }
  0x32   :  { %1053 = shalt.err (!%p1050_p9)
}
  0x33   :  { %50 = dma.hbm_to_vmem [thread:$0]  %s1334_s3, 2816, %s45_s10, [#allocation6], %s1107_s28, %s1107_s28, %s1108_s29  }
  0x34   :  { %1098 = dma.done.wait [#allocation3], 32  }
  0x35   :  { %1099 = vsyncadd [#allocation3], 4294967264 }
  0x36   :  { %1100 = dma.done.wait [#allocation6], 4864  }
  0x37   :  { %1101 = vsyncadd [#allocation6], 4294962432  ;;  %v1111_v0 = vmov 0.0|0.0   ;;  %vm1112_vm0 = vmmov 0   ;;  %v1113_v1 = vmov 0.0   ;;  %v70_v2 = vld [vmem:[#allocation5 + $0x10] sm:$0xff] }
  0x38   :  { %898 = vmatprep.subr.bf16.mxu1 %v1111_v0  ;;  %820 = vmatprep.mubr.msk.f32.mxu1 %vm1112_vm0, %v1113_v1  ;;  %v71_v3 = vld [vmem:[#allocation5 + $0x18] sm:$0xff]  ;;  %v72_v4 = vld [vmem:[#allocation5 + $0x20] sm:$0xff]  ;;  %v73_v6 = vld [vmem:[#allocation5 + $0x28] sm:$0xff]  ;;  %vm74_vm1 = vcmask 261120   ;;  %vm148_vm2 = vcmask 130048   ;;  %s1115_s29 = smov 96  }
  0x39   :  { %925 = vmatprep.subr.bf16.mxu0 %v1111_v0  ;;  %895 = vmatprep.mubr.msk.f32.mxu0 %vm1112_vm0, %v1113_v1  ;;  %v899_v5 = vpack.c.bf16 %v71_v3, %v70_v2  ;;  %v64_v7 = vld [vmem:[%s1332_s1] sm:$0x3]  ;;  %v902_v8 = vpack.c.bf16 %v73_v6, %v72_v4  ;;  %v68_v9 = vld [vmem:[#allocation5] sm:$0xff]  ;;  %v69_v10 = vld [vmem:[#allocation5 + $0x8] sm:$0xff]  ;;  %s1114_s1 = smov 64   ;;  %s1116_s6 = smov 32  }
  0x3a   :  { %65 = vst [vmem:[#allocation9] sm:$0x3] %v64_v7  ;;  %v905_v11 = vpack.c.bf16 %v69_v10, %v68_v9  ;;  %v67_v13 = vld [vmem:[#allocation2] sm:$0x3]  ;;  %v763_v17 = vld [vmem:[#allocation5 + $0x30] ss:$0 sm:$0xff] }
  0x3b   :  { %900 = vmatpush3.bf16.msra.mxu1 %v899_v5  ;;  %v259_v21 = vld [vmem:[#allocation5 + $0x58] sm:$0xff]  ;;  %v260_v22 = vld [vmem:[#allocation5 + $0x60] sm:$0xff]  ;;  %v261_v23 = vld [vmem:[#allocation5 + $0x68] sm:$0xff]  ;;  %s1117_s7 = smov 112   ;;  %s1118_s8 = smov 120   ;;  %vm664_vm3 = vcmask 64512  }
  0x3c   :  { %901 = vmatprep.subr.bf16.mxu1 %v1111_v0  ;;  %v908_v24 = vpack.c.bf16 %v260_v22, %v259_v21  ;;  %v262_v25 = vld [vmem:[#allocation5 + $0x70] sm:$0xff]  ;;  %v255_v38 = vld [vmem:[#allocation5 + $0x38] sm:$0xff]  ;;  %v256_v39 = vld [vmem:[#allocation5 + $0x40] sm:$0xff]  ;;  %s1119_s9 = smov 104   ;;  %s1120_s10 = smov 72   ;;  %vm667_vm4 = vcmask 195584  }
  0x3d   :  { %v911_v26 = vpack.c.bf16 %v262_v25, %v261_v23  ;;  %v257_v40 = vld [vmem:[#allocation5 + $0x48] sm:$0xff]  ;;  %v914_v41 = vpack.c.bf16 %v256_v39, %v255_v38  ;;  %v258_v42 = vld [vmem:[#allocation5 + $0x50] sm:$0xff]  ;;  %v767_v51 = vld [vmem:[#allocation5 + $0x78] ss:$0 sm:$0xff]  ;;  %s1121_s11 = smov 88   ;;  %s1122_s12 = smov 80  }
  0x3e   :  { %v917_v43 = vpack.c.bf16 %v258_v42, %v257_v40  ;;  %v462_v3 = vld [vmem:[#allocation7] sm:$0xff]  ;;  %v463_v4 = vld [vmem:[#allocation7 + $0x8] sm:$0xff]  ;;  %v464_v5 = vld [vmem:[#allocation7 + $0x10] sm:$0xff]  ;;  %vm457_vm5 = vcmask 523264   ;;  %vm459_vm6 = vcmask 785408   ;;  %s1123_s13 = smov [#allocation9]  }
  0x3f   :  { %903 = vmatpush3.bf16.msra.mxu1 %v902_v8  ;;  %v920_v6 = vpack.c.bf16 %v463_v4, %v462_v3  ;;  %v465_v7 = vld [vmem:[#allocation7 + $0x18] sm:$0xff]  ;;  %v547_v10 = vld [vmem:[#allocation7 + $0x28] sm:$0xff]  ;;  %v556_v25 = vld [vmem:[#allocation7 + $0x70] sm:$0xff]  ;;  %s747_s14 = sshll.u32 %s1123_s13, 4  ;;  %s748_s14 = int_to_ptr.vmem [resolvable:$true] %s747_s14 }
  0x40   :  { %904 = vmatprep.subr.bf16.mxu1 %v1111_v0  ;;  %v923_v8 = vpack.c.bf16 %v465_v7, %v464_v5  ;;  %v769_v38 = vld [vmem:[#allocation7 + $0x20] ss:$0 sm:$0xff]  ;;  %s1054_s15 = scalar_lea.vmem %s748_s14, 32  ;;  %p1059_p11 = scmp.lt.s32.totalorder %s748_s14, %s748_s14 }
  0x41   :  { %v1208_v12 = vld [vmem:[#allocation9] sm:$0x3]  ;;  %p1055_p10 = scmp.ne.s32.totalorder %s748_s14, %s1054_s15  ;;  %p1060_p12 = scmp.lt.s32.totalorder %s1054_s15, %s1054_s15 }
  0x42   :  { %821 = vmatmul.mubr.msk.f32.vlgmr.msra.gmra.mrb[0].mxu1 %vm74_vm1, %v1208_v12 }
  0x43   :  { %906 = vmatpush3.bf16.msra.mxu1 %v905_v11  ;;  %827 = vmatprep.mubr.msk.f32.mxu1 %vm1112_vm0, %v1113_v1  ;;  %v548_v11 = vld [vmem:[#allocation7 + $0x30] sm:$0xff]  ;;  %p1061_p13 = por %p1060_p12, %p1059_p11 }
  0x44   :  { %907 = vmatprep.subr.bf16.mxu1 %v1111_v0 }
  0x45   :  { %p1062_p0 = pnand %p1061_p13, %p1055_p10 }
  0x46   :  { %828 = vmatmul.mubr.msk.f32.vlgmr.msra.gmra.mrb[2].mxu1 %vm148_vm2, %v67_v13  ;;  %v926_v13 = vpack.c.bf16 %v548_v11, %v547_v10 }
  0x47   :  { %838 = vmatprep.mubr.msk.f32.mxu1 %vm1112_vm0, %v1113_v1  ;;  %909 = vmatpush3.bf16.msra.mxu1 %v908_v24  ;;  %v555_v24 = vld [vmem:[#allocation7 + $0x68] sm:$0xff] }
  0x48   :  { %910 = vmatprep.subr.bf16.mxu1 %v1111_v0  ;;  %927 = vmatpush3.bf16.msra.mxu0 %v926_v13 }
  0x49   :  { %928 = vmatprep.subr.bf16.mxu0 %v1111_v0 }
  0x4b   :  { %912 = vmatpush3.bf16.msra.mxu1 %v911_v26  ;;  %v938_v26 = vpack.c.bf16 %v556_v25, %v555_v24 }
  0x4c   :  { %913 = vmatprep.subr.bf16.mxu1 %v1111_v0 }
 0x115   :  { %v144_v14 = vpop.f32.mrb[0].mxu1 }
 0x116   :  { %v822_v15 = vpop.f32.mrb[1].mxu1 }
 0x119   :  { %v218_v16 = vpop.f32.mrb[2].mxu1 }
 0x11a   :  { %v219_v18 = vadd.f32 %v218_v16, %v144_v14  ;;  %v829_v19 = vpop.f32.mrb[3].mxu1  ;;  %v550_v14 = vld [vmem:[#allocation7 + $0x40] sm:$0xff]  ;;  %v551_v16 = vld [vmem:[#allocation7 + $0x48] sm:$0xff] }
 0x11b   :  { %v553_v19 = vld [vmem:[#allocation7 + $0x58] sm:$0xff] }
 0x11c   :  { %v227_v20 = vadd.f32 %v763_v17, %v219_v18  ;;  %v552_v17 = vld [vmem:[#allocation7 + $0x50] sm:$0xff] }
 0x11d   :  { %v932_v18 = vpack.c.bf16 %v552_v17, %v551_v16 }
 0x11e   :  { %968 = vtanh.f32 %v227_v20  ;;  %v764_v28 = vmul.f32 -1.442695, %v227_v20  ;;  %v554_v20 = vld [vmem:[#allocation7 + $0x60] sm:$0xff] }
 0x11f   :  { %v935_v23 = vpack.c.bf16 %v554_v20, %v553_v19 }
 0x120   :  { %970 = vpow2.f32 %v764_v28  ;;  %v558_v28 = vld [vmem:[#allocation7 + $0x80] sm:$0xff] }
 0x128   :  { %v969_v27 = vpop.eup %968 }
 0x129   :  { %240 = vrot.lane.b32.xlu0 %v969_v27, %s1114_s1  ;;  %v557_v27 = vld [vmem:[#allocation7 + $0x78] sm:$0xff] }
 0x12a   :  { %v971_v29 = vpop.eup %970 }
 0x12b   :  { %v231_v30 = vadd.f32 1.0, %v971_v29  ;;  %v941_v29 = vpack.c.bf16 %v558_v28, %v557_v27 }
 0x12d   :  { %235 = vrot.lane.b32.xlu0 %v1208_v12, %s1115_s29  ;;  %972 = vrcp.f32 %v231_v30 }
 0x137   :  { %v973_v31 = vpop.eup %972 }
 0x19b   :  { %v241_v32 = vpop.permute.xlu0 %240 }
 0x19c   :  { %v243_v33 = vmul.f32 %v973_v31, %v241_v32  ;;  %v560_v32 = vld [vmem:[#allocation7 + $0x90] sm:$0xff] }
 0x19e   :  { %245 = vrot.lane.b32.xlu1 %v243_v33, %s1116_s6 }
 0x19f   :  { %v236_v34 = vpop.permute.xlu0 %235 }
 0x1a0   :  { %839 = vmatmul.mubr.msk.f32.vlgmr.msra.gmra.mrb[4].mxu1 %vm74_vm1, %v236_v34  ;;  %v238_v35 = vmul.f32 %v973_v31, %v236_v34  ;;  %v561_v34 = vld [vmem:[#allocation7 + $0x98] sm:$0xff] }
 0x1a1   :  { %849 = vmatprep.mubr.msk.f32.mxu1 %vm1112_vm0, %v1113_v1  ;;  %915 = vmatpush3.bf16.msra.mxu1 %v914_v41 }
 0x1a2   :  { %916 = vmatprep.subr.bf16.mxu1 %v1111_v0 }
 0x1a5   :  { %918 = vmatpush3.bf16.msra.mxu1 %v917_v43 }
 0x1a6   :  { %919 = vmatprep.subr.bf16.mxu1 %v1111_v0 }
 0x210   :  { %v246_v36 = vpop.permute.xlu1 %245 }
 0x211   :  { %v1227_v37 = vadd.f32 %v246_v36, %v238_v35  ;;  %v562_v35 = vld [vmem:[#allocation7 + $0xa0] sm:$0xff] }
 0x212   :  { %v947_v36 = vpack.c.bf16 %v562_v35, %v561_v34 }
 0x213   :  { %974 = vtanh.f32 %v1227_v37 }
 0x21d   :  { %v975_v44 = vpop.eup %974 }
 0x21e   :  { %251 = vrot.lane.b32.xlu1 %v975_v44, %s1114_s1  ;;  %v771_v44 = vld [vmem:[#allocation7 + $0xa8] ss:$0 sm:$0xff] }
 0x273   :  { %v331_v45 = vpop.f32.mrb[4].mxu1 }
 0x274   :  { %v840_v46 = vpop.f32.mrb[5].mxu1 }
 0x290   :  { %v252_v47 = vpop.permute.xlu1 %251 }
 0x291   :  { %v254_v48 = vmul.f32 %v973_v31, %v252_v47  ;;  %v559_v31 = vld [vmem:[#allocation7 + $0x88] sm:$0xff] }
 0x292   :  { %v944_v33 = vpack.c.bf16 %v560_v32, %v559_v31 }
 0x293   :  { %336 = vrot.lane.b32.xlu0 %v254_v48, %s1116_s6 }
 0x297   :  { %423 = vrot.lane.b32.xlu0 %v1208_v12, %s1114_s1  ;;  %v549_v12 = vld [vmem:[#allocation7 + $0x38] sm:$0xff] }
 0x298   :  { %v929_v15 = vpack.c.bf16 %v550_v14, %v549_v12 }
 0x29a   :  { %930 = vmatpush3.bf16.msra.mxu0 %v929_v15 }
 0x29b   :  { %931 = vmatprep.subr.bf16.mxu0 %v1111_v0 }
 0x29e   :  { %933 = vmatpush3.bf16.msra.mxu0 %v932_v18 }
 0x29f   :  { %934 = vmatprep.subr.bf16.mxu0 %v1111_v0 }
 0x2a2   :  { %936 = vmatpush3.bf16.msra.mxu0 %v935_v23 }
 0x2a3   :  { %937 = vmatprep.subr.bf16.mxu0 %v1111_v0 }
 0x2a6   :  { %939 = vmatpush3.bf16.msra.mxu0 %v938_v26 }
 0x2a7   :  { %940 = vmatprep.subr.bf16.mxu0 %v1111_v0 }
 0x2aa   :  { %942 = vmatpush3.bf16.msra.mxu0 %v941_v29 }
 0x2ab   :  { %943 = vmatprep.subr.bf16.mxu0 %v1111_v0 }
 0x2ae   :  { %945 = vmatpush3.bf16.msra.mxu0 %v944_v33 }
 0x2af   :  { %946 = vmatprep.subr.bf16.mxu0 %v1111_v0 }
 0x2b2   :  { %948 = vmatpush3.bf16.msra.mxu0 %v947_v36 }
 0x305   :  { %v1236_v49 = vpop.permute.xlu0 %336 }
 0x306   :  { %850 = vmatmul.mubr.msk.f32.vlgmr.msra.gmra.mrb[6].mxu1 %vm74_vm1, %v1236_v49 }
 0x307   :  { %860 = vmatprep.mubr.msk.f32.mxu1 %vm1112_vm0, %v1113_v1  ;;  %921 = vmatpush3.bf16.msra.mxu1 %v920_v6 }
 0x308   :  { %922 = vmatprep.subr.bf16.mxu1 %v1111_v0 }
 0x309   :  { %v424_v62 = vpop.permute.xlu0 %423 }
 0x30b   :  { %924 = vmatpush3.bf16.msra.mxu1 %v923_v8 }
 0x3d9   :  { %v406_v50 = vpop.f32.mrb[6].mxu1 }
 0x3da   :  { %v407_v52 = vadd.f32 %v406_v50, %v331_v45  ;;  %v851_v53 = vpop.f32.mrb[7].mxu1 }
 0x3dc   :  { %v415_v54 = vadd.f32 %v767_v51, %v407_v52 }
 0x3de   :  { %976 = vtanh.f32 %v415_v54  ;;  %v768_v56 = vmul.f32 -1.442695, %v415_v54 }
 0x3e0   :  { %978 = vpow2.f32 %v768_v56 }
 0x3e8   :  { %v977_v55 = vpop.eup %976 }
 0x3e9   :  { %428 = vrot.lane.b32.xlu1 %v977_v55, %s1114_s1 }
 0x3ea   :  { %v979_v57 = vpop.eup %978 }
 0x3eb   :  { %v419_v58 = vadd.f32 1.0, %v979_v57 }
 0x3ed   :  { %980 = vrcp.f32 %v419_v58 }
 0x3f7   :  { %v981_v59 = vpop.eup %980 }
 0x3f8   :  { %v426_v63 = vmul.f32 %v981_v59, %v424_v62 }
 0x45b   :  { %v429_v60 = vpop.permute.xlu1 %428 }
 0x45c   :  { %v431_v61 = vmul.f32 %v981_v59, %v429_v60 }
 0x45e   :  { %433 = vrot.lane.b32.xlu1 %v431_v61, %s1116_s6 }
 0x4d0   :  { %v434_v1 = vpop.permute.xlu1 %433 }
 0x4d1   :  { %v1244_v2 = vadd.f32 %v434_v1, %v426_v63 }
 0x4d3   :  { %982 = vtanh.f32 %v1244_v2 }
 0x4dd   :  { %v983_v9 = vpop.eup %982 }
 0x4de   :  { %439 = vrot.lane.b32.xlu0 %v983_v9, %s1114_s1 }
 0x550   :  { %v440_v21 = vpop.permute.xlu0 %439 }
 0x551   :  { %v1251_v22 = vmul.f32 %v981_v59, %v440_v21 }
 0x553   :  { %471 = vrot.lane.b32.xlu1 %v1251_v22, %s1116_s6 }
 0x5c5   :  { %v472_v30 = vpop.permute.xlu1 %471 }
 0x5c6   :  { %861 = vmatmul.mubr.msk.f32.vlgmr.msra.gmra.mrb[8].mxu1 %vm74_vm1, %v472_v30 }
 0x699   :  { %v541_v39 = vpop.f32.mrb[8].mxu1 }
 0x69a   :  { %v542_v40 = vadd.f32 %v769_v38, %v541_v39  ;;  %v862_v41 = vpop.f32.mrb[9].mxu1 }
 0x69c   :  { %v545_v42 = vmul.f32 0.01, %v542_v40 }
 0x69e   :  { %v546_v43 = vmax.f32 %v542_v40, %v545_v42 }
 0x6a0   :  { %896 = vmatmul.mubr.f32.vlgmr.msra.gmra.mrb[0].mxu0 %v546_v43 }
 0x773   :  { %v634_v45 = vpop.f32.mrb[0].mxu0 }
 0x774   :  { %v1261_v46 = vadd.f32 %v771_v44, %v634_v45  ;;  %v897_v47 = vpop.f32.mrb[1].mxu0 }
 0x776   :  { %643 = vrot.lane.b32.xlu1 %v1261_v46, %s1117_s7  ;;  %639 = vrot.lane.b32.xlu0 %v1261_v46, %s1118_s8 }
 0x77a   :  { %647 = vrot.lane.b32.xlu0 %v1261_v46, %s1119_s9 }
 0x7e8   :  { %v640_v0 = vpop.permute.xlu0 %639  ;;  %v644_v50 = vpop.permute.xlu1 %643 }
 0x7e9   :  { %v642_v48 = vmax.f32 %v1261_v46, %v640_v0 }
 0x7eb   :  { %v646_v51 = vmax.f32 %v642_v48, %v644_v50 }
 0x7ec   :  { %v648_v52 = vpop.permute.xlu0 %647 }
 0x7ed   :  { %v650_v53 = vmax.f32 %v646_v51, %v648_v52 }
 0x7ef   :  { %655 = vrot.lane.b32.xlu0 %v650_v53, %s1120_s10  ;;  %652 = vrot.lane.b32.xlu1 %v650_v53, %s1114_s1 }
 0x7f3   :  { %661 = vrot.lane.b32.xlu0 %v650_v53, %s1121_s11  ;;  %658 = vrot.lane.b32.xlu1 %v650_v53, %s1122_s12 }
 0x7f7   :  { %674 = vrot.lane.b32.xlu0 %v1261_v46, %s1115_s29 }
 0x861   :  { %v656_v54 = vpop.permute.xlu0 %655  ;;  %v653_v55 = vpop.permute.xlu1 %652 }
 0x862   :  { %v665_v56 = vsel %vm664_vm3, %v653_v55, %v656_v54 }
 0x865   :  { %v662_v57 = vpop.permute.xlu0 %661  ;;  %v659_v58 = vpop.permute.xlu1 %658 }
 0x866   :  { %v666_v59 = vsel %vm148_vm2, %v665_v56, %v659_v58 }
 0x867   :  { %v668_v60 = vsel %vm667_vm4, %v666_v59, %v662_v57 }
 0x868   :  { %670 = vrot.lane.b32.xlu1 %v668_v60, %s1114_s1 }
 0x869   :  { %v675_v63 = vpop.permute.xlu0 %674 }
 0x8da   :  { %v671_v61 = vpop.permute.xlu1 %670 }
 0x8db   :  { %v673_v62 = vsub.f32 %v1261_v46, %v671_v61 }
 0x8dd   :  { %678 = vrot.lane.b32.xlu1 %v673_v62, %s1115_s29 }
 0x94f   :  { %v679_v1 = vpop.permute.xlu1 %678 }
 0x950   :  { %v681_v3 = vsel %vm74_vm1, %v675_v63, %v679_v1 }
 0x951   :  { %v682_v4 = vmul.f32 1.442695, %v681_v3 }
 0x953   :  { %984 = vpow2.f32 %v682_v4 }
 0x95d   :  { %v985_v5 = vpop.eup %984 }
 0x95e   :  { %689 = vrot.lane.b32.xlu1 %v985_v5, %s1117_s7  ;;  %685 = vrot.lane.b32.xlu0 %v985_v5, %s1118_s8 }
 0x962   :  { %693 = vrot.lane.b32.xlu0 %v985_v5, %s1119_s9 }
 0x9d0   :  { %v686_v6 = vpop.permute.xlu0 %685  ;;  %v690_v8 = vpop.permute.xlu1 %689 }
 0x9d1   :  { %v688_v7 = vadd.f32 %v985_v5, %v686_v6 }
 0x9d3   :  { %v692_v9 = vadd.f32 %v690_v8, %v688_v7 }
 0x9d4   :  { %v694_v10 = vpop.permute.xlu0 %693 }
 0x9d5   :  { %v696_v11 = vadd.f32 %v694_v10, %v692_v9 }
 0x9d7   :  { %986 = vrcp.f32 %v696_v11 }
 0x9e1   :  { %v987_v12 = vpop.eup %986 }
 0x9e2   :  { %703 = vrot.lane.b32.xlu0 %v987_v12, %s1119_s9  ;;  %700 = vrot.lane.b32.xlu1 %v987_v12, %s1115_s29 }
 0x9e6   :  { %709 = vrot.lane.b32.xlu0 %v987_v12, %s1118_s8  ;;  %706 = vrot.lane.b32.xlu1 %v987_v12, %s1117_s7 }
 0x9ea   :  { %445 = vrot.lane.b32.xlu0 %v1251_v22, %s1114_s1 }
 0x9ee   :  { %449 = vrot.lane.b32.xlu0 %v1227_v37, %s1116_s6 }
 0x9f2   :  { %453 = vrot.lane.b32.xlu0 %v1244_v2, %s1114_s1 }
 0xa54   :  { %v704_v13 = vpop.permute.xlu0 %703  ;;  %v701_v14 = vpop.permute.xlu1 %700 }
 0xa55   :  { %v712_v15 = vsel %vm664_vm3, %v701_v14, %v704_v13 }
 0xa58   :  { %v710_v16 = vpop.permute.xlu0 %709  ;;  %v707_v17 = vpop.permute.xlu1 %706 }
 0xa59   :  { %v713_v18 = vsel %vm148_vm2, %v712_v15, %v707_v17 }
 0xa5a   :  { %v714_v19 = vsel %vm667_vm4, %v713_v18, %v710_v16 }
 0xa5b   :  { %716 = vrot.lane.b32.xlu1 %v714_v19, %s1116_s6 }
 0xa5c   :  { %v446_v20 = vpop.permute.xlu0 %445 }
 0xa5d   :  { %v456_v37 = vsel %vm74_vm1, %v1236_v49, %v446_v20 }
 0xa5f   :  { %720 = vrot.lane.b32.xlu1 %v985_v5, %s1116_s6 }
 0xa60   :  { %v450_v21 = vpop.permute.xlu0 %449 }
 0xa61   :  { %v458_v2 = vsel %vm457_vm5, %v456_v37, %v450_v21 }
 0xa64   :  { %v454_v22 = vpop.permute.xlu0 %453 }
 0xa65   :  { %v460_v23 = vsel %vm459_vm6, %v458_v2, %v454_v22 }
 0xa66   :  { %461 = vst [vmem:[#allocation9] sm:$0x3] %v460_v23 }
 0xa67   :  { %1065 = shalt.err (!%p1062_p0)
}
 0xa68   :  { %s1066_s2 = scalar_lea.hbm %s1336_s5, 32 }
 0xa69   :  { %p1067_p1 = scmp.ne.s32.totalorder %s1336_s5, %s1066_s2  ;;  %p1070_p2 = scmp.lt.u32.totalorder %s1066_s2, %s1336_s5 }
 0xa6b   :  { %p1072_p3 = pnand %p1070_p2, %p1067_p1 }
 0xa6d   :  { %1075 = shalt.err (!%p1072_p3)
}
 0xa6e   :  { %750 = dma.vmem_to_hbm [thread:$0]  %s748_s14, 32, %s1336_s5, [#allocation10]  }
 0xa6f   :  { %s1124_s24 = smov [#allocation8]  }
 0xa70   :  { %s737_s25 = sshll.u32 %s1124_s24, 4  ;;  %s738_s25 = int_to_ptr.vmem [resolvable:$true] %s737_s25 }
 0xa71   :  { %s1076_s26 = scalar_lea.vmem %s738_s25, 32  ;;  %p1081_p5 = scmp.lt.s32.totalorder %s738_s25, %s738_s25 }
 0xa72   :  { %p1077_p4 = scmp.ne.s32.totalorder %s738_s25, %s1076_s26  ;;  %p1082_p6 = scmp.lt.s32.totalorder %s1076_s26, %s1076_s26 }
 0xa74   :  { %p1083_p7 = por %p1082_p6, %p1081_p5 }
 0xa76   :  { %p1084_p8 = pnand %p1083_p7, %p1077_p4 }
 0xacd   :  { %v717_v49 = vpop.permute.xlu1 %716 }
 0xace   :  { %v719_v24 = vmul.f32 %v985_v5, %v717_v49 }
 0xad0   :  { %724 = vrot.lane.b32.xlu1 %v719_v24, %s1116_s6 }
 0xad1   :  { %v721_v25 = vpop.permute.xlu1 %720 }
 0xad2   :  { %v727_v26 = vsel %vm74_vm1, %v1261_v46, %v721_v25 }
 0xb42   :  { %v725_v27 = vpop.permute.xlu1 %724 }
 0xb43   :  { %v728_v28 = vsel %vm457_vm5, %v727_v26, %v725_v27 }
 0xb44   :  { %v729_v29 = vsel %vm459_vm6, %v728_v28, 0.0 }
 0xb45   :  { %730 = vst [vmem:[#allocation8] sm:$0x3] %v729_v29 }
 0xb46   :  { %1087 = shalt.err (!%p1084_p8)
}
 0xb47   :  { %s1088_s0 = scalar_lea.hbm %s1335_s4, 32 }
 0xb48   :  { %p1089_p9 = scmp.ne.s32.totalorder %s1335_s4, %s1088_s0  ;;  %p1092_p10 = scmp.lt.u32.totalorder %s1088_s0, %s1335_s4 }
 0xb4a   :  { %p1094_p11 = pnand %p1092_p10, %p1089_p9 }
 0xb4c   :  { %1097 = shalt.err (!%p1094_p11)
}
 0xb4d   :  { %740 = dma.vmem_to_hbm [thread:$0]  %s738_s25, 32, %s1335_s4, [#allocation4]  }
 0xb4e   :  { %1102 = dma.done.wait [#allocation4], 32  }
 0xb4f   :  { %1103 = vsyncadd [#allocation4], 4294967264 }
 0xb50   :  { %1104 = dma.done.wait [#allocation10], 32  }
 0xb51   :  { %1105 = vsyncadd [#allocation10], 4294967264 }
 0xb52   :  { %757 = vsyncpa [#allocation3], 1 }
 0xb53   :  { %758 = vsyncpa [#allocation6], 1 }
 0xb54   :  { %759 = vsyncpa [#allocation4], 1 }
 0xb55   :  { %760 = vsyncpa [#allocation10], 1 }

</bundles_post_ra>
